<compile_context>
chip_gen: v7x
topology: tpu7x:2x2x1
jax: 0.10.0
libtpu: 0.0.40
codegen_flags: <defaults>
</compile_context>

<pallas_src>
import functools

import jax
import jax.numpy as jnp
from jax.experimental import pallas as pl
from jax.experimental.pallas import tpu as pltpu

_LANE = 128
_MAX_LANE_W = 1024                       # lane-dense slab width (multiple of 128)
_TARGET_BLOCK_BYTES = 2 * 1024 * 1024    # per-operand block; 4 ops x 2 bufs = 16 MiB
_VMEM_LIMIT_BYTES = 32 * 1024 * 1024     # explicit: safe on v5e/v6e/v7x


# ----------------------------- kernels --------------------------------------


def _split_kernel(real_ref, imag_ref, out_r_ref, out_i_ref):
    # 'split' activation: independent tanh on real and imaginary parts.
    out_r_ref[...] = jnp.tanh(real_ref[...])
    out_i_ref[...] = jnp.tanh(imag_ref[...])


def _modrelu_kernel(real_ref, imag_ref, out_r_ref, out_i_ref):
    # 'modReLU' activation, simplified to a masked identity:
    #   mod = sqrt(r^2 + i^2) >= 0      => relu(mod) == mod
    #   mod*cos(phase) == r, mod*sin(phase) == i  whenever mod > 0
    #   at mod == 0 the torch path also yields (0, 0)
    # Mask computed in f32 so bf16 inputs don't underflow to the zero branch
    # early; ~(mod2 <= 0) lets NaN inputs pass through (propagate).
    r = real_ref[...]
    i = imag_ref[...]
    rf = r.astype(jnp.float32)
    jf = i.astype(jnp.float32)
    mod2 = rf * rf + jf * jf
    nz = jnp.logical_not(mod2 <= 0.0)
    zero = jnp.zeros((), dtype=r.dtype)
    out_r_ref[...] = jnp.where(nz, r, zero)
    out_i_ref[...] = jnp.where(nz, i, zero)


# ----------------------------- wrapper ---------------------------------------


def _round_up(x, m):
    return ((x + m - 1) // m) * m


def _block_rows_for(rows, lane_w, itemsize):
    """Pick block rows so each block is ~_TARGET_BLOCK_BYTES and the grid can
    have >= 2 steps (v7x core sharding) when there are enough rows."""
    target = max(8, (_TARGET_BLOCK_BYTES // (lane_w * itemsize)) // 8 * 8)
    block = min(rows, target)
    if rows >= 16:
        block = min(block, _round_up(pl.cdiv(rows, 2), 8))
    return block


def _block_elems_for(n, itemsize):
    """1-D (ragged) path: block element count, multiple of 128, ~target bytes."""
    target = max(_LANE, (_TARGET_BLOCK_BYTES // itemsize) // _LANE * _LANE)
    block = min(target, _round_up(n, _LANE))
    if n >= 2 * _LANE:
        block = min(block, _round_up(pl.cdiv(n, 2), _LANE))
    return block


@functools.partial(jax.jit, static_argnames=("activation_type",))
def complex_activation(real, imag, activation_type="split"):
    if real.shape != imag.shape or real.dtype != imag.dtype:
        raise ValueError("real/imag must match in shape and dtype")

    if activation_type == "split":
        kernel = _split_kernel
    elif activation_type == "modReLU":
        kernel = _modrelu_kernel
    else:
        raise ValueError(f"unknown activation_type: {activation_type}")

    orig_shape = real.shape
    n = real.size
    itemsize = jnp.dtype(real.dtype).itemsize

    cparams = pltpu.CompilerParams(
        dimension_semantics=("parallel",),
        vmem_limit_bytes=_VMEM_LIMIT_BYTES,
    )

    if n % _LANE == 0:
        # Common case (e.g. NCHW activations): lane-dense 2-D slab, no copies.
        lane_w = _MAX_LANE_W
        while n % lane_w != 0:
            lane_w //= 2
        rows = n // lane_w
        block_rows = _block_rows_for(rows, lane_w, itemsize)
        spec = pl.BlockSpec((block_rows, lane_w), lambda i: (i, 0))
        grid = (pl.cdiv(rows, block_rows),)
        slab_shape = (rows, lane_w)
    else:
        # Ragged element count: 1-D grid over the flat array; Pallas masks the
        # partial final block -> no jnp.pad on inputs, no slice on outputs.
        block_elems = _block_elems_for(n, itemsize)
        spec = pl.BlockSpec((block_elems,), lambda i: (i,))
        grid = (pl.cdiv(n, block_elems),)
        slab_shape = (n,)

    r_in = real.reshape(slab_shape)
    i_in = imag.reshape(slab_shape)

    out_r, out_i = pl.pallas_call(
        kernel,
        grid=grid,
        in_specs=[spec, spec],
        out_specs=[spec, spec],
        out_shape=(
            jax.ShapeDtypeStruct(slab_shape, real.dtype),
            jax.ShapeDtypeStruct(slab_shape, imag.dtype),
        ),
        compiler_params=cparams,
    )(r_in, i_in)

    return out_r.reshape(orig_shape), out_i.reshape(orig_shape)


# ----------------------------- main ------------------------------------------


def _check(real, imag):
    # 'split' (module default)
    out_r, out_i = complex_activation(real, imag, activation_type="split")
    jax.block_until_ready((out_r, out_i))
    assert out_r.shape == real.shape and out_i.shape == imag.shape
    assert jnp.allclose(out_r, jnp.tanh(real), atol=1e-6)
    assert jnp.allclose(out_i, jnp.tanh(imag), atol=1e-6)

    # 'modReLU'
    mr, mi = complex_activation(real, imag, activation_type="modReLU")
    jax.block_until_ready((mr, mi))
    mod = jnp.sqrt(real**2 + imag**2)
    phase = jnp.arctan2(imag, real)
    ref_r = jnp.maximum(mod, 0.0) * jnp.cos(phase)
    ref_i = jnp.maximum(mod, 0.0) * jnp.sin(phase)
    assert jnp.allclose(mr, ref_r, atol=1e-5)
    assert jnp.allclose(mi, ref_i, atol=1e-5)


if __name__ == "__main__":
    key = jax.random.PRNGKey(0)
    k_r, k_i, k_r2, k_i2, k_r3, k_i3 = jax.random.split(key, 6)

    # Primary case: NCHW activations, as the surrounding PyTorch code supplies.
    B, C, H, W = 2, 4, 16, 16
    real = jax.random.normal(k_r, (B, C, H, W), dtype=jnp.float32)
    imag = jax.random.normal(k_i, (B, C, H, W), dtype=jnp.float32)
    _check(real, imag)

    # Ragged size: exercises the pad-free 1-D partial-block path.
    real2 = jax.random.normal(k_r2, (3, 5, 7, 11), dtype=jnp.float32)
    imag2 = jax.random.normal(k_i2, (3, 5, 7, 11), dtype=jnp.float32)
    _check(real2, imag2)

    # Larger size: exercises the multi-block pipelined grid (>=2 grid steps).
    real3 = jax.random.normal(k_r3, (4, 8, 128, 128), dtype=jnp.float32)
    imag3 = jax.random.normal(k_i3, (4, 8, 128, 128), dtype=jnp.float32)
    _check(real3, imag3)

    # bf16 path: byte-based block sizing + f32 mask in modReLU.
    rb = real.astype(jnp.bfloat16)
    ib = imag.astype(jnp.bfloat16)
    br, bi = complex_activation(rb, ib, activation_type="split")
    jax.block_until_ready((br, bi))
    assert jnp.allclose(br.astype(jnp.float32),
                        jnp.tanh(rb.astype(jnp.float32)), atol=1e-2)
    assert jnp.allclose(bi.astype(jnp.float32),
                        jnp.tanh(ib.astype(jnp.float32)), atol=1e-2)
    mrb, mib = complex_activation(rb, ib, activation_type="modReLU")
    jax.block_until_ready((mrb, mib))
    assert jnp.array_equal(mrb, rb) and jnp.array_equal(mib, ib)

    print("KERNEL_OK")
</pallas_src>

<mosaic_0001>
module attributes {stable_mosaic.version = 11 : i64} {
  func.func @_split_kernel(%arg0: i32, %arg1: memref<2x1024xf32, #tpu.memory_space<vmem>>, %arg2: memref<2x1024xf32, #tpu.memory_space<vmem>>, %arg3: memref<2x1024xf32, #tpu.memory_space<vmem>>, %arg4: memref<2x1024xf32, #tpu.memory_space<vmem>>) attributes {dimension_semantics = [#tpu.dimension_semantics<parallel>], iteration_bounds = array<i64: 1>, scalar_prefetch = 0 : i64, scratch_operands = 0 : i64, tpu.core_type = #tpu.core_type<tc>, window_params = [{transform_indices = @transform_0, window_bounds = array<i64: 2, 1024>}, {transform_indices = @transform_1, window_bounds = array<i64: 2, 1024>}, {transform_indices = @transform_2, window_bounds = array<i64: 2, 1024>}, {transform_indices = @transform_3, window_bounds = array<i64: 2, 1024>}]} {
    %c0 = arith.constant 0 : index
    %c0_0 = arith.constant 0 : index
    %0 = vector.load %arg1[%c0, %c0_0] : memref<2x1024xf32, #tpu.memory_space<vmem>>, vector<2x1024xf32>
    %1 = math.tanh %0 : vector<2x1024xf32>
    %c0_1 = arith.constant 0 : index
    %c0_2 = arith.constant 0 : index
    %2 = vector.load %arg3[%c0_1, %c0_2] : memref<2x1024xf32, #tpu.memory_space<vmem>>, vector<2x1024xf32>
    tpu.vector_store %arg3[%c0_1, %c0_2], %1 {strides = array<i32>} : memref<2x1024xf32, #tpu.memory_space<vmem>>, vector<2x1024xf32>,
    %c0_3 = arith.constant 0 : index
    %c0_4 = arith.constant 0 : index
    %3 = vector.load %arg2[%c0_3, %c0_4] : memref<2x1024xf32, #tpu.memory_space<vmem>>, vector<2x1024xf32>
    %4 = math.tanh %3 : vector<2x1024xf32>
    %c0_5 = arith.constant 0 : index
    %c0_6 = arith.constant 0 : index
    %5 = vector.load %arg4[%c0_5, %c0_6] : memref<2x1024xf32, #tpu.memory_space<vmem>>, vector<2x1024xf32>
    tpu.vector_store %arg4[%c0_5, %c0_6], %4 {strides = array<i32>} : memref<2x1024xf32, #tpu.memory_space<vmem>>, vector<2x1024xf32>,
    return
  }
  func.func @transform_0(%arg0: i32) -> (i32, i32) {
    %c0_i32 = arith.constant 0 : i32
    %c0_i32_0 = arith.constant 0 : i32
    return %arg0, %c0_i32 : i32, i32
  }
  func.func @transform_1(%arg0: i32) -> (i32, i32) {
    %c0_i32 = arith.constant 0 : i32
    %c0_i32_0 = arith.constant 0 : i32
    return %arg0, %c0_i32 : i32, i32
  }
  func.func @transform_2(%arg0: i32) -> (i32, i32) {
    %c0_i32 = arith.constant 0 : i32
    %c0_i32_0 = arith.constant 0 : i32
    return %arg0, %c0_i32 : i32, i32
  }
  func.func @transform_3(%arg0: i32) -> (i32, i32) {
    %c0_i32 = arith.constant 0 : i32
    %c0_i32_0 = arith.constant 0 : i32
    return %arg0, %c0_i32 : i32, i32
  }
}

</mosaic_0001>

<bundles_post_ra>
// kernel: complex_activation.1
= control target key start
LH: loop header
LB: loop body
LE: loop exit
PB: predicated region body
PF: predicated region fallthrough
CT: control target
= control target key end

     0   :  { %s85_s0 = inlined_call_operand.vmem [shape: f32[2,1024], index: 0, kind: input, shape index: {}]   ;;  %s86_s1 = inlined_call_operand.vmem [shape: f32[2,1024], index: 1, kind: input, shape index: {}]   ;;  %s87_s2 = inlined_call_operand.vmem [shape: f32[2,1024], index: 2, kind: output, shape index: {0}]   ;;  %s88_s3 = inlined_call_operand.vmem [shape: f32[2,1024], index: 3, kind: output, shape index: {1}]  }
   0x1   :  { %v13_v0 = vld [vmem:[%s85_s0] sm:$0xff]  ;;  %v14_v1 = vld [vmem:[%s85_s0 + $0x8] sm:$0xff] }
   0x2   :  { %v19_v2 = vld [vmem:[%s86_s1] sm:$0xff]  ;;  %33 = vtanh.f32 %v13_v0  ;;  %v20_v3 = vld [vmem:[%s86_s1 + $0x8] sm:$0xff] }
   0x3   :  { %35 = vtanh.f32 %v14_v1 }
   0x4   :  { %37 = vtanh.f32 %v19_v2 }
   0x5   :  { %39 = vtanh.f32 %v20_v3 }
   0xc   :  { %v34_v4 = vpop.eup %33 }
   0xd   :  { %v36_v5 = vpop.eup %35  ;;  %17 = vst [vmem:[%s87_s2] sm:$0xff] %v34_v4 }
   0xe   :  { %v38_v6 = vpop.eup %37  ;;  %18 = vst [vmem:[%s87_s2 + $0x8] sm:$0xff] %v36_v5 }
   0xf   :  { %v40_v7 = vpop.eup %39  ;;  %23 = vst [vmem:[%s88_s3] sm:$0xff] %v38_v6 }
  0x10   :  { %24 = vst [vmem:[%s88_s3 + $0x8] sm:$0xff] %v40_v7 }

</bundles_post_ra>
